<compile_context>
chip_gen: v6e
topology: v6e:2x2x1
jax: 0.10.0
libtpu: 0.0.40
codegen_flags: <defaults>
</compile_context>

<pallas_src>
import jax
import jax.numpy as jnp
from jax.experimental import pallas as pl
from jax.experimental.pallas import tpu as pltpu

KSIZE = 5  # conv kernel (window) size


def _round_up(x, m):
    return (x + m - 1) // m * m


# --------------------------------------------------------------------------
# Fused kernel: banded one-hot char "gather"+conv, relu/max, proj, highway
# --------------------------------------------------------------------------
def fused_embedding_kernel(ids_ref, m_ref, cb_ref, other_ref,
                           wpo_ref, wpc_ref,
                           w1_ref, b1_ref, w2_ref, b2_ref, o_ref):
    _, w, tn = ids_ref.shape           # max_word_len, words in this tile
    kvp, f2 = m_ref.shape
    vp = kvp // KSIZE                  # char vocab padded to a 128 multiple
    f = f2 // 2                        # n_filters (hi|lo split doubles lanes)
    t = w - KSIZE + 1                  # number of conv output positions
    h = wpc_ref.shape[1]               # hidden size

    # ---- char path: banded one-hot -> ONE bf16 MXU matmul ------------------
    ids = ids_ref[0]                                             # (w, tn) i32
    iota_c = jax.lax.broadcasted_iota(jnp.int32, (w, tn, vp), 2)
    oh = (ids[:, :, None] == iota_c).astype(jnp.bfloat16)        # (w, tn, vp)
    oh = oh.reshape(w * tn, vp)        # collapse leading dims (tn % 8 == 0)

    # Banded LHS: row r = time*tn + word; group j = chars at position time+j.
    # Slices start at multiples of tn (8-aligned rows) and concat at vp
    # (128-aligned lanes): no relayout.  The shift is applied to indices and
    # the K-way window sum is folded into the single MXU contraction.
    bh = jnp.concatenate(
        [oh[j * tn:(j + t) * tn, :] for j in range(KSIZE)], axis=1)  # (t*tn, K*vp)

    # RHS = [hi | lo] bf16 split of (char_table @ conv_w); one-hot LHS is
    # exact in bf16, so adding the two halves reproduces the f32 tables.
    y = jnp.dot(bh, m_ref[...], preferred_element_type=jnp.float32)  # (t*tn, 2f)
    scores = y[:, :f] + y[:, f:]                                     # (t*tn, f)

    # max over time = reduce over the leading axis of aligned (tn, f) slabs.
    mx = jnp.max(scores.reshape(t, tn, f), axis=0)                   # (tn, f)
    # bias constant in time + relu monotone -> both hoisted out of the max.
    emb_char = jnp.maximum(mx + cb_ref[...], 0.0)                    # (tn, f)

    # ---- projection (split wp -> the concat is never materialised) --------
    x = (jnp.dot(other_ref[...], wpo_ref[...], preferred_element_type=jnp.float32)
         + jnp.dot(emb_char, wpc_ref[...], preferred_element_type=jnp.float32))

    # ---- 2-layer highway, gate|transform weights packed --------------------
    def hwy(xv, w_ref, b_ref):
        yv = jnp.dot(xv, w_ref[...], preferred_element_type=jnp.float32) + b_ref[...]
        g = jax.nn.sigmoid(yv[:, :h])
        tr = jnp.maximum(yv[:, h:], 0.0)
        return g * tr + (1.0 - g) * xv

    x = hwy(x, w1_ref, b1_ref)
    x = hwy(x, w2_ref, b2_ref)

    # TODO(synk): lane-dense output folding (H=32 -> masked 32-lane stores) is
    # low priority here; revisit only if production H stays < 128.
    o_ref[...] = x.astype(o_ref.dtype)


# --------------------------------------------------------------------------
# Forward wrapper (embedding gathers / weight packing / padding in XLA glue)
# --------------------------------------------------------------------------
def embedding_tag_forward(params, x_word, x_char, x_pos, x_ner, *, tile_n=256):
    # tile_n=256 fits v5e's 16 MiB default scoped VMEM after the layout fixes;
    # 512 is a good choice on v6e / v7x (32 MiB scoped).
    b, l, wmax = x_char.shape
    assert wmax >= KSIZE, "max_word_len must be >= conv kernel size"
    wv, cv = params["word_vectors"], params["char_vectors"]
    pv, nv = params["pos_vectors"], params["ner_vectors"]
    e = wv.shape[1]
    k, _c, f = params["conv_w"].shape
    h = params["wp"].shape[1]
    p, q = pv.shape[1], nv.shape[1]
    vchar = cv.shape[0]
    n = b * l
    d_other = e + p + q
    vp = _round_up(vchar, 128)          # pad char vocab to a lane multiple

    # -- weight pre-packing (tiny; hoist/cache in a real model) --------------
    # fold char table into the conv weights, stack windows on the contraction.
    m_all = jnp.einsum("vc,kcf->kvf", cv, params["conv_w"],
                       precision=jax.lax.Precision.HIGHEST)       # (K, V, F)
    m_pad = jnp.pad(m_all, ((0, 0), (0, vp - vchar), (0, 0)))     # (K, Vp, F)
    m_band = m_pad.reshape(k * vp, f)                             # (K*Vp, F)
    m_hi = m_band.astype(jnp.bfloat16)
    m_lo = (m_band - m_hi.astype(jnp.float32)).astype(jnp.bfloat16)
    m_hilo = jnp.concatenate([m_hi, m_lo], axis=1)                # (K*Vp, 2F) bf16

    wp = params["wp"]
    wp_char = wp[e:e + f, :]                                      # char rows (F)
    wp_other = jnp.concatenate([wp[:e, :], wp[e + f:, :]], 0)     # word|pos|ner
    w1 = jnp.concatenate([params["wg1"], params["wt1"]], 1)       # (H, 2H)
    b1 = jnp.concatenate([params["bg1"], params["bt1"]], 1)       # (1, 2H)
    w2 = jnp.concatenate([params["wg2"], params["wt2"]], 1)
    b2 = jnp.concatenate([params["bg2"], params["bt2"]], 1)

    # -- word / POS / NER streams gathered in XLA (large-vocab gathers) ------
    emb_other = jnp.concatenate(
        [wv[x_word], pv[x_pos], nv[x_ner]], axis=-1).reshape(n, d_other)

    # -- tile selection: tn % 8 == 0 (layout-preserving in-kernel reshapes),
    #    >= 2 grid steps when possible so both v7x TensorCores get work.
    tile_n = _round_up(tile_n, 8)
    n8 = _round_up(n, 8)
    tn = min(tile_n, n8)
    if n8 // tn < 2 and n8 >= 16:
        tn = _round_up((n8 + 1) // 2, 8)
    n_pad = _round_up(n, tn)
    n_grid = n_pad // tn

    ids = x_char.reshape(n, wmax).astype(jnp.int32)
    if n_pad != n:
        pad = n_pad - n
        ids = jnp.pad(ids, ((0, pad), (0, 0)))          # padded rows -> garbage,
        emb_other = jnp.pad(emb_other, ((0, pad), (0, 0)))  # sliced off below
    # per-tile transposed id slabs: (n_grid, W, tn) -> lane-dense i32 blocks
    ids_t = ids.reshape(n_grid, tn, wmax).transpose(0, 2, 1)

    def full_spec(arr):
        r = arr.ndim
        return pl.BlockSpec(arr.shape, lambda i, _r=r: (0,) * _r)

    out = pl.pallas_call(
        fused_embedding_kernel,
        out_shape=jax.ShapeDtypeStruct((n_pad, h), jnp.float32),
        grid=(n_grid,),
        in_specs=[
            pl.BlockSpec((1, wmax, tn), lambda i: (i, 0, 0)),   # char ids (transposed)
            full_spec(m_hilo),                                  # folded conv tables
            full_spec(params["conv_b"]),                        # conv bias
            pl.BlockSpec((tn, d_other), lambda i: (i, 0)),      # word|pos|ner emb
            full_spec(wp_other), full_spec(wp_char),            # split projection
            full_spec(w1), full_spec(b1),                       # highway layer 1
            full_spec(w2), full_spec(b2),                       # highway layer 2
        ],
        out_specs=pl.BlockSpec((tn, h), lambda i: (i, 0)),
        compiler_params=pltpu.CompilerParams(
            dimension_semantics=("parallel",),
            vmem_limit_bytes=32 * 1024 * 1024),
    )(ids_t, m_hilo, params["conv_b"], emb_other,
      wp_other, wp_char, w1, b1, w2, b2)

    return out[:n].reshape(b, l, h)


# --------------------------------------------------------------------------
# Pure-JAX reference (mirrors the PyTorch module semantics)
# --------------------------------------------------------------------------
def reference_forward(params, x_word, x_char, x_pos, x_ner):
    b, l, wmax = x_char.shape
    k, _c, f = params["conv_w"].shape
    xc = params["char_vectors"][x_char.reshape(-1, wmax)]        # (N, W, C)
    t = wmax - k + 1
    scores = jnp.stack(
        [jnp.einsum("nkc,kcf->nf", xc[:, i:i + k, :], params["conv_w"])
         + params["conv_b"] for i in range(t)], axis=1)          # (N, T, F)
    emb_c = jnp.max(jax.nn.relu(scores), axis=1).reshape(b, l, f)
    emb_w = params["word_vectors"][x_word]
    emb_p = params["pos_vectors"][x_pos]
    emb_n = params["ner_vectors"][x_ner]
    x = jnp.concatenate([emb_w, emb_c, emb_p, emb_n], axis=-1) @ params["wp"]
    for wg, bg, wt, bt in (("wg1", "bg1", "wt1", "bt1"),
                           ("wg2", "bg2", "wt2", "bt2")):
        g = jax.nn.sigmoid(x @ params[wg] + params[bg])
        tr = jax.nn.relu(x @ params[wt] + params[bt])
        x = g * tr + (1.0 - g) * x
    return x


if __name__ == "__main__":
    # small shapes: batch=2, seq_len=8, max_word_len=16,
    #               char_emb=16, word_emb=n_filters=32, hidden=32,
    #               n_pos_classes=8, n_ner_classes=4
    B, L, W = 2, 8, 16
    C, E, H = 16, 32, 32
    P, Q = 8, 4
    WORD_VOCAB, CHAR_VOCAB = 100, 50

    key = jax.random.PRNGKey(0)
    ks = jax.random.split(key, 14)
    params = {
        "word_vectors": jax.random.normal(ks[0], (WORD_VOCAB, E), jnp.float32) * 0.1,
        "char_vectors": jax.random.normal(ks[1], (CHAR_VOCAB, C), jnp.float32) * 0.1,
        "pos_vectors": jnp.eye(P, dtype=jnp.float32),   # one-hot POS vectors
        "ner_vectors": jnp.eye(Q, dtype=jnp.float32),   # one-hot NER vectors
        "conv_w": jax.random.normal(ks[2], (KSIZE, C, E), jnp.float32) * 0.1,
        "conv_b": jax.random.normal(ks[3], (1, E), jnp.float32) * 0.1,
        "wp":  jax.random.normal(ks[4], (2 * E + P + Q, H), jnp.float32) * 0.1,
        "wg1": jax.random.normal(ks[5], (H, H), jnp.float32) * 0.1,
        "bg1": jax.random.normal(ks[6], (1, H), jnp.float32) * 0.1,
        "wt1": jax.random.normal(ks[7], (H, H), jnp.float32) * 0.1,
        "bt1": jax.random.normal(ks[8], (1, H), jnp.float32) * 0.1,
        "wg2": jax.random.normal(ks[9], (H, H), jnp.float32) * 0.1,
        "bg2": jax.random.normal(ks[10], (1, H), jnp.float32) * 0.1,
        "wt2": jax.random.normal(ks[11], (H, H), jnp.float32) * 0.1,
        "bt2": jax.random.normal(ks[12], (1, H), jnp.float32) * 0.1,
    }

    kw, kc, kp, kn = jax.random.split(ks[13], 4)
    x_word = jax.random.randint(kw, (B, L), 0, WORD_VOCAB, dtype=jnp.int32)
    x_char = jax.random.randint(kc, (B, L, W), 0, CHAR_VOCAB, dtype=jnp.int32)
    x_pos = jax.random.randint(kp, (B, L), 0, P, dtype=jnp.int32)
    x_ner = jax.random.randint(kn, (B, L), 0, Q, dtype=jnp.int32)

    out = jax.jit(embedding_tag_forward)(params, x_word, x_char, x_pos, x_ner)
    out = jax.block_until_ready(out)
    with jax.default_matmul_precision("float32"):
        ref = reference_forward(params, x_word, x_char, x_pos, x_ner)
    ref = jax.block_until_ready(ref)

    assert out.shape == (B, L, H)
    assert jnp.allclose(out, ref, atol=1e-4, rtol=1e-4), float(
        jnp.max(jnp.abs(out - ref)))
    print("KERNEL_OK")
</pallas_src>

<mosaic_0001>
module attributes {stable_mosaic.version = 11 : i64} {
  func.func @fused_embedding_kernel(%arg0: i32, %arg1: memref<1x16x8xi32, #tpu.memory_space<vmem>>, %arg2: memref<640x64xbf16, #tpu.memory_space<vmem>>, %arg3: memref<1x32xf32, #tpu.memory_space<vmem>>, %arg4: memref<8x44xf32, #tpu.memory_space<vmem>>, %arg5: memref<44x32xf32, #tpu.memory_space<vmem>>, %arg6: memref<32x32xf32, #tpu.memory_space<vmem>>, %arg7: memref<32x64xf32, #tpu.memory_space<vmem>>, %arg8: memref<1x64xf32, #tpu.memory_space<vmem>>, %arg9: memref<32x64xf32, #tpu.memory_space<vmem>>, %arg10: memref<1x64xf32, #tpu.memory_space<vmem>>, %arg11: memref<8x32xf32, #tpu.memory_space<vmem>>) attributes {dimension_semantics = [#tpu.dimension_semantics<parallel>], iteration_bounds = array<i64: 2>, scalar_prefetch = 0 : i64, scratch_operands = 0 : i64, tpu.core_type = #tpu.core_type<tc>, window_params = [{transform_indices = @transform_0, window_bounds = array<i64: 1, 16, 8>}, {pipeline_mode = #tpu.pipeline_mode<synchronous>, transform_indices = @transform_1, window_bounds = array<i64: 640, 64>}, {pipeline_mode = #tpu.pipeline_mode<synchronous>, transform_indices = @transform_2, window_bounds = array<i64: 1, 32>}, {transform_indices = @transform_3, window_bounds = array<i64: 8, 44>}, {pipeline_mode = #tpu.pipeline_mode<synchronous>, transform_indices = @transform_4, window_bounds = array<i64: 44, 32>}, {pipeline_mode = #tpu.pipeline_mode<synchronous>, transform_indices = @transform_5, window_bounds = array<i64: 32, 32>}, {pipeline_mode = #tpu.pipeline_mode<synchronous>, transform_indices = @transform_6, window_bounds = array<i64: 32, 64>}, {pipeline_mode = #tpu.pipeline_mode<synchronous>, transform_indices = @transform_7, window_bounds = array<i64: 1, 64>}, {pipeline_mode = #tpu.pipeline_mode<synchronous>, transform_indices = @transform_8, window_bounds = array<i64: 32, 64>}, {pipeline_mode = #tpu.pipeline_mode<synchronous>, transform_indices = @transform_9, window_bounds = array<i64: 1, 64>}, {transform_indices = @transform_10, window_bounds = array<i64: 8, 32>}]} {
    %c0 = arith.constant 0 : index
    %c0_0 = arith.constant 0 : index
    %c0_1 = arith.constant 0 : index
    %0 = vector.load %arg1[%c0, %c0_0, %c0_1] : memref<1x16x8xi32, #tpu.memory_space<vmem>>, vector<1x16x8xi32>
    %1 = vector.shape_cast %0 : vector<1x16x8xi32> to vector<16x8xi32>
    %2 = tpu.iota {dimensions = array<i32: 2>} : vector<16x8x128xi32>
    %3 = vector.shape_cast %1 : vector<16x8xi32> to vector<16x8x1xi32>
    %4 = vector.broadcast %3 : vector<16x8x1xi32> to vector<16x8x128xi32>
    %5 = arith.cmpi eq, %4, %2 : vector<16x8x128xi32>
    %6 = arith.extui %5 : vector<16x8x128xi1> to vector<16x8x128xi32>
    %7 = arith.sitofp %6 : vector<16x8x128xi32> to vector<16x8x128xf32>
    %8 = arith.truncf %7 : vector<16x8x128xf32> to vector<16x8x128xbf16>
    %9 = vector.shape_cast %8 : vector<16x8x128xbf16> to vector<128x128xbf16>
    %10 = vector.extract_strided_slice %9 {offsets = [0, 0], sizes = [96, 128], strides = [1, 1]} : vector<128x128xbf16> to vector<96x128xbf16>
    %11 = vector.extract_strided_slice %9 {offsets = [8, 0], sizes = [96, 128], strides = [1, 1]} : vector<128x128xbf16> to vector<96x128xbf16>
    %12 = vector.extract_strided_slice %9 {offsets = [16, 0], sizes = [96, 128], strides = [1, 1]} : vector<128x128xbf16> to vector<96x128xbf16>
    %13 = vector.extract_strided_slice %9 {offsets = [24, 0], sizes = [96, 128], strides = [1, 1]} : vector<128x128xbf16> to vector<96x128xbf16>
    %14 = vector.extract_strided_slice %9 {offsets = [32, 0], sizes = [96, 128], strides = [1, 1]} : vector<128x128xbf16> to vector<96x128xbf16>
    %15 = tpu.concatenate %10, %11, %12, %13, %14 in 1 : vector<96x128xbf16>, vector<96x128xbf16>, vector<96x128xbf16>, vector<96x128xbf16>, vector<96x128xbf16> -> vector<96x640xbf16>
    %c0_2 = arith.constant 0 : index
    %c0_3 = arith.constant 0 : index
    %16 = vector.load %arg2[%c0_2, %c0_3] : memref<640x64xbf16, #tpu.memory_space<vmem>>, vector<640x64xbf16>
    %cst = arith.constant dense<0.000000e+00> : vector<96x64xf32>
    %17 = tpu.matmul %15, %16, %cst {dimension_numbers = #tpu.dot_dimension_numbers<[1], [0], [0], [1], [0, 0, 1, 1], [], []>} : vector<96x640xbf16>, vector<640x64xbf16>, vector<96x64xf32> -> vector<96x64xf32>
    %18 = vector.extract_strided_slice %17 {offsets = [0, 0], sizes = [96, 32], strides = [1, 1]} : vector<96x64xf32> to vector<96x32xf32>
    %19 = vector.extract_strided_slice %17 {offsets = [0, 32], sizes = [96, 32], strides = [1, 1]} : vector<96x64xf32> to vector<96x32xf32>
    %20 = arith.addf %18, %19 : vector<96x32xf32>
    %21 = vector.shape_cast %20 : vector<96x32xf32> to vector<12x8x32xf32>
    %cst_4 = arith.constant dense<0xFF800000> : vector<8x32xf32>
    %22 = vector.multi_reduction <maximumf>, %21, %cst_4 [0] : vector<12x8x32xf32> to vector<8x32xf32>
    %c0_5 = arith.constant 0 : index
    %c0_6 = arith.constant 0 : index
    %23 = vector.load %arg3[%c0_5, %c0_6] : memref<1x32xf32, #tpu.memory_space<vmem>>, vector<1x32xf32>
    %24 = vector.broadcast %23 : vector<1x32xf32> to vector<8x32xf32>
    %25 = arith.addf %22, %24 : vector<8x32xf32>
    %cst_7 = arith.constant 0.000000e+00 : f32
    %26 = vector.broadcast %cst_7 : f32 to vector<8x32xf32>
    %27 = arith.maximumf %25, %26 : vector<8x32xf32>
    %c0_8 = arith.constant 0 : index
    %c0_9 = arith.constant 0 : index
    %28 = vector.load %arg4[%c0_8, %c0_9] : memref<8x44xf32, #tpu.memory_space<vmem>>, vector<8x44xf32>
    %c0_10 = arith.constant 0 : index
    %c0_11 = arith.constant 0 : index
    %29 = vector.load %arg5[%c0_10, %c0_11] : memref<44x32xf32, #tpu.memory_space<vmem>>, vector<44x32xf32>
    %cst_12 = arith.constant dense<0.000000e+00> : vector<8x32xf32>
    %30 = tpu.matmul %28, %29, %cst_12 {dimension_numbers = #tpu.dot_dimension_numbers<[1], [0], [0], [1], [0, 0, 1, 1], [], []>} : vector<8x44xf32>, vector<44x32xf32>, vector<8x32xf32> -> vector<8x32xf32>
    %c0_13 = arith.constant 0 : index
    %c0_14 = arith.constant 0 : index
    %31 = vector.load %arg6[%c0_13, %c0_14] : memref<32x32xf32, #tpu.memory_space<vmem>>, vector<32x32xf32>
    %cst_15 = arith.constant dense<0.000000e+00> : vector<8x32xf32>
    %32 = tpu.matmul %27, %31, %cst_15 {dimension_numbers = #tpu.dot_dimension_numbers<[1], [0], [0], [1], [0, 0, 1, 1], [], []>} : vector<8x32xf32>, vector<32x32xf32>, vector<8x32xf32> -> vector<8x32xf32>
    %33 = arith.addf %30, %32 : vector<8x32xf32>
    %c0_16 = arith.constant 0 : index
    %c0_17 = arith.constant 0 : index
    %34 = vector.load %arg7[%c0_16, %c0_17] : memref<32x64xf32, #tpu.memory_space<vmem>>, vector<32x64xf32>
    %cst_18 = arith.constant dense<0.000000e+00> : vector<8x64xf32>
    %35 = tpu.matmul %33, %34, %cst_18 {dimension_numbers = #tpu.dot_dimension_numbers<[1], [0], [0], [1], [0, 0, 1, 1], [], []>} : vector<8x32xf32>, vector<32x64xf32>, vector<8x64xf32> -> vector<8x64xf32>
    %c0_19 = arith.constant 0 : index
    %c0_20 = arith.constant 0 : index
    %36 = vector.load %arg8[%c0_19, %c0_20] : memref<1x64xf32, #tpu.memory_space<vmem>>, vector<1x64xf32>
    %37 = vector.broadcast %36 : vector<1x64xf32> to vector<8x64xf32>
    %38 = arith.addf %35, %37 : vector<8x64xf32>
    %39 = vector.extract_strided_slice %38 {offsets = [0, 0], sizes = [8, 32], strides = [1, 1]} : vector<8x64xf32> to vector<8x32xf32>
    %40 = arith.negf %39 : vector<8x32xf32>
    %41 = math.exp %40 : vector<8x32xf32>
    %cst_21 = arith.constant 1.000000e+00 : f32
    %42 = vector.broadcast %cst_21 : f32 to vector<8x32xf32>
    %43 = arith.addf %42, %41 : vector<8x32xf32>
    %44 = arith.divf %42, %43 : vector<8x32xf32>
    %45 = vector.extract_strided_slice %38 {offsets = [0, 32], sizes = [8, 32], strides = [1, 1]} : vector<8x64xf32> to vector<8x32xf32>
    %cst_22 = arith.constant 0.000000e+00 : f32
    %46 = vector.broadcast %cst_22 : f32 to vector<8x32xf32>
    %47 = arith.maximumf %45, %46 : vector<8x32xf32>
    %48 = arith.mulf %44, %47 : vector<8x32xf32>
    %cst_23 = arith.constant 1.000000e+00 : f32
    %49 = vector.broadcast %cst_23 : f32 to vector<8x32xf32>
    %50 = arith.subf %49, %44 : vector<8x32xf32>
    %51 = arith.mulf %50, %33 : vector<8x32xf32>
    %52 = arith.addf %48, %51 : vector<8x32xf32>
    %c0_24 = arith.constant 0 : index
    %c0_25 = arith.constant 0 : index
    %53 = vector.load %arg9[%c0_24, %c0_25] : memref<32x64xf32, #tpu.memory_space<vmem>>, vector<32x64xf32>
    %cst_26 = arith.constant dense<0.000000e+00> : vector<8x64xf32>
    %54 = tpu.matmul %52, %53, %cst_26 {dimension_numbers = #tpu.dot_dimension_numbers<[1], [0], [0], [1], [0, 0, 1, 1], [], []>} : vector<8x32xf32>, vector<32x64xf32>, vector<8x64xf32> -> vector<8x64xf32>
    %c0_27 = arith.constant 0 : index
    %c0_28 = arith.constant 0 : index
    %55 = vector.load %arg10[%c0_27, %c0_28] : memref<1x64xf32, #tpu.memory_space<vmem>>, vector<1x64xf32>
    %56 = vector.broadcast %55 : vector<1x64xf32> to vector<8x64xf32>
    %57 = arith.addf %54, %56 : vector<8x64xf32>
    %58 = vector.extract_strided_slice %57 {offsets = [0, 0], sizes = [8, 32], strides = [1, 1]} : vector<8x64xf32> to vector<8x32xf32>
    %59 = arith.negf %58 : vector<8x32xf32>
    %60 = math.exp %59 : vector<8x32xf32>
    %cst_29 = arith.constant 1.000000e+00 : f32
    %61 = vector.broadcast %cst_29 : f32 to vector<8x32xf32>
    %62 = arith.addf %61, %60 : vector<8x32xf32>
    %63 = arith.divf %61, %62 : vector<8x32xf32>
    %64 = vector.extract_strided_slice %57 {offsets = [0, 32], sizes = [8, 32], strides = [1, 1]} : vector<8x64xf32> to vector<8x32xf32>
    %cst_30 = arith.constant 0.000000e+00 : f32
    %65 = vector.broadcast %cst_30 : f32 to vector<8x32xf32>
    %66 = arith.maximumf %64, %65 : vector<8x32xf32>
    %67 = arith.mulf %63, %66 : vector<8x32xf32>
    %cst_31 = arith.constant 1.000000e+00 : f32
    %68 = vector.broadcast %cst_31 : f32 to vector<8x32xf32>
    %69 = arith.subf %68, %63 : vector<8x32xf32>
    %70 = arith.mulf %69, %52 : vector<8x32xf32>
    %71 = arith.addf %67, %70 : vector<8x32xf32>
    %c0_32 = arith.constant 0 : index
    %c0_33 = arith.constant 0 : index
    %72 = vector.load %arg11[%c0_32, %c0_33] : memref<8x32xf32, #tpu.memory_space<vmem>>, vector<8x32xf32>
    tpu.vector_store %arg11[%c0_32, %c0_33], %71 {strides = array<i32>} : memref<8x32xf32, #tpu.memory_space<vmem>>, vector<8x32xf32>,
    return
  }
  func.func @transform_0(%arg0: i32) -> (i32, i32, i32) {
    %c0_i32 = arith.constant 0 : i32
    %c0_i32_0 = arith.constant 0 : i32
    %c0_i32_1 = arith.constant 0 : i32
    return %arg0, %c0_i32, %c0_i32_0 : i32, i32, i32
  }
  func.func @transform_1(%arg0: i32) -> (i32, i32) {
    %c0_i32 = arith.constant 0 : i32
    %c0_i32_0 = arith.constant 0 : i32
    %c0_i32_1 = arith.constant 0 : i32
    return %c0_i32, %c0_i32_0 : i32, i32
  }
  func.func @transform_2(%arg0: i32) -> (i32, i32) {
    %c0_i32 = arith.constant 0 : i32
    %c0_i32_0 = arith.constant 0 : i32
    %c0_i32_1 = arith.constant 0 : i32
    return %c0_i32, %c0_i32_0 : i32, i32
  }
  func.func @transform_3(%arg0: i32) -> (i32, i32) {
    %c0_i32 = arith.constant 0 : i32
    %c0_i32_0 = arith.constant 0 : i32
    return %arg0, %c0_i32 : i32, i32
  }
  func.func @transform_4(%arg0: i32) -> (i32, i32) {
    %c0_i32 = arith.constant 0 : i32
    %c0_i32_0 = arith.constant 0 : i32
    %c0_i32_1 = arith.constant 0 : i32
    return %c0_i32, %c0_i32_0 : i32, i32
  }
  func.func @transform_5(%arg0: i32) -> (i32, i32) {
    %c0_i32 = arith.constant 0 : i32
    %c0_i32_0 = arith.constant 0 : i32
    %c0_i32_1 = arith.constant 0 : i32
    return %c0_i32, %c0_i32_0 : i32, i32
  }
  func.func @transform_6(%arg0: i32) -> (i32, i32) {
    %c0_i32 = arith.constant 0 : i32
    %c0_i32_0 = arith.constant 0 : i32
    %c0_i32_1 = arith.constant 0 : i32
    return %c0_i32, %c0_i32_0 : i32, i32
  }
  func.func @transform_7(%arg0: i32) -> (i32, i32) {
    %c0_i32 = arith.constant 0 : i32
    %c0_i32_0 = arith.constant 0 : i32
    %c0_i32_1 = arith.constant 0 : i32
    return %c0_i32, %c0_i32_0 : i32, i32
  }
  func.func @transform_8(%arg0: i32) -> (i32, i32) {
    %c0_i32 = arith.constant 0 : i32
    %c0_i32_0 = arith.constant 0 : i32
    %c0_i32_1 = arith.constant 0 : i32
    return %c0_i32, %c0_i32_0 : i32, i32
  }
  func.func @transform_9(%arg0: i32) -> (i32, i32) {
    %c0_i32 = arith.constant 0 : i32
    %c0_i32_0 = arith.constant 0 : i32
    %c0_i32_1 = arith.constant 0 : i32
    return %c0_i32, %c0_i32_0 : i32, i32
  }
  func.func @transform_10(%arg0: i32) -> (i32, i32) {
    %c0_i32 = arith.constant 0 : i32
    %c0_i32_0 = arith.constant 0 : i32
    return %arg0, %c0_i32 : i32, i32
  }
}

</mosaic_0001>

<bundles_post_ra>
// kernel: embedding_tag_forward.1
= control target key start
LH: loop header
LB: loop body
LE: loop exit
PB: predicated region body
PF: predicated region fallthrough
CT: control target
= control target key end

     0   :  { %s2886_s0 = inlined_call_operand.vmem [shape: s32[2,16,8], index: 0, kind: input, shape index: {}]   ;;  %s2887_s1 = inlined_call_operand.vmem [shape: bf16[640,64], index: 1, kind: input, shape index: {}]   ;;  %s2888_s2 = inlined_call_operand.vmem [shape: f32[1,32], index: 2, kind: input, shape index: {}]   ;;  %s2889_s3 = inlined_call_operand.vmem [shape: f32[16,44], index: 3, kind: input, shape index: {}]   ;;  %s2890_s4 = inlined_call_operand.vmem [shape: f32[44,32], index: 4, kind: input, shape index: {}]   ;;  %s2891_s5 = inlined_call_operand.vmem [shape: f32[32,32], index: 5, kind: input, shape index: {}]   ;;  %s2892_s6 = inlined_call_operand.vmem [shape: f32[32,64], index: 6, kind: input, shape index: {}]   ;;  %s2893_s7 = inlined_call_operand.vmem [shape: f32[1,64], index: 7, kind: input, shape index: {}]   ;;  %s2894_s8 = inlined_call_operand.vmem [shape: f32[32,64], index: 8, kind: input, shape index: {}]   ;;  %s2895_s9 = inlined_call_operand.vmem [shape: f32[1,64], index: 9, kind: input, shape index: {}]   ;;  %s2896_s10 = inlined_call_operand.hbm [shape: f32[16,32], index: 10, kind: output, shape index: {}]  }
   0x1   :  { %2897 = sst [smem:[#allocation5_spill]] %s2886_s0 }
   0x2   :  { %15 = vsyncpa [#allocation3], 0 }
   0x3   :  { %17 = vsyncpa [#allocation3 + $0x1], 0  ;;  %s2318_s13 = smov 0   ;;  %s2320_s14 = smov 0  }
   0x4   :  { %s2322_s15 = smov 0   ;;  %s2324_s16 = smov 0  }
   0x5 LB: > { %s2339_s17 = sadd.s32 4294967295, %s2256_s16   ;;  %s1720_s18 = sadd.s32 4294967294, %s2256_s16   ;;  %s2256_s16 = sphi %s2324_s16, %s2918_s16   ;;  %s2252_s15 = sphi %s2322_s15, %s2917_s15   ;;  %s2248_s14 = sphi %s2320_s14, %s2916_s14   ;;  %s2244_s13 = sphi %s2318_s13, %s2915_s13  }
   0x6   : > { %s2343_s19 = sadd.s32 1, %s2256_s16   ;;  %s250_s20 = sadd.s32 1, %s2252_s15 }
   0x7   : > { %s247_s21 = ssub.s32 %s2256_s16, %s2343_s19  ;;  %p260_p0 = scmp.ne.s32.totalorder %s2252_s15, %s2248_s14 }
   0x8   : > { %p248_p1 = scmp.eq.s32.totalorder %s247_s21, 0  ;;  %p261_p2 = scmp.eq.s32.totalorder %s2339_s17, 1 }
   0x9   : > { %p266_p3 = scmp.ne.s32.totalorder %s2248_s14, %s2244_s13  ;;  %p267_p4 = scmp.eq.s32.totalorder %s1720_s18, 1 }
   0xa   : > { %s2354_s22 = scalar_select %p248_p1, %s2252_s15, %s250_s20  }
   0xb   : > { %p2356_p5 = por %p261_p2, %p260_p0  ;;  %p2360_p6 = por %p267_p4, %p266_p3 }
   0xc   : > { %p1723_p7 = scmp.ge.s32.totalorder %s2256_s16, 1  ;;  %p324_p8 = scmp.lt.s32.totalorder %s2256_s16, 3 }
   0xe   : > { %p325_p9 = pnand %p1723_p7, %p324_p8 }
   0xf   : > { %p366_p10 = scmp.lt.s32.totalorder (!%p325_p9), %s2339_s17, 1  ;;  %s2900_s0 = sld [smem:[#allocation5_spill]] (!%p325_p9) }
  0x10   : > { %328 = sbr.rel (%p325_p9) target bundleno = 1400 (0x578), region = 60  ;;  %s2260_s21 = smov (!%p325_p9), 96  }
  0x11   : > { %s2262_s28 = smov (!%p325_p9), [#allocation2]  }
  0x15   : > { %v378_v0 = vlaneseq  ;;  %v2148_v1 = vld [vmem:[%s2887_s1 + $0x78] sm:$0xff]   ;;  %s2374_s29 = scalar_select %p366_p10, %s2339_s17, 1  ;;  %v2150_v4 = vld [vmem:[%s2887_s1 + $0x70] sm:$0xff]   ;;  %v2154_v19 = vld [vmem:[%s2887_s1 + $0x68] sm:$0xff]  }
  0x16   : > { %v2149_v2 = vld [vmem:[%s2887_s1 + $0x38] sm:$0xff]   ;;  %1889 = vmatprep.subr.bf16.mxu0 %v2148_v1  ;;  %v2151_v7 = vld [vmem:[%s2887_s1 + $0x30] sm:$0xff]   ;;  %v2155_v20 = vld [vmem:[%s2887_s1 + $0x28] sm:$0xff]  }
  0x17   : > { %v2377_v3 = vshrl.u32 %v378_v0, 7  ;;  %1890 = vmatpush3.bf16.msra.mxu0 %v2149_v2  ;;  %s1813_s12 = sshll.u32 %s2374_s29, 4  ;;  %v2152_v14 = vld [vmem:[%s2887_s1 + $0xf8] sm:$0xff]   ;;  %v2156_v22 = vld [vmem:[%s2887_s1 + $0xf0] sm:$0xff]   ;;  %v2158_v27 = vld [vmem:[%s2887_s1 + $0x60] sm:$0xff]   ;;  %v2513_v63 = vand.u32 127, %v378_v0 }
  0x18   : > { %1891 = vmatprep.subr.bf16.mxu0 %v2150_v4  ;;  %s2391_s26 = scalar_lea.vmem %s2900_s0, %s1813_s12  ;;  %v2153_v16 = vld [vmem:[%s2887_s1 + $0xb8] sm:$0xff]   ;;  %1941 = vmatprep.subr.bf16.mxu1 %v2152_v14  ;;  %v2157_v24 = vld [vmem:[%s2887_s1 + $0xb0] sm:$0xff]   ;;  %v2159_v28 = vld [vmem:[%s2887_s1 + $0x20] sm:$0xff]   ;;  %v2258_v4 = vmov 1.0|1.0   ;;  %s1727_s30 = sshll.u32 %s2374_s29, 3 }
  0x19   : > { %v389_v5 = vsub.s32 1, %v2377_v3  ;;  %v382_v6 = vsub.s32 0, %v2377_v3  ;;  %v396_v8 = vsub.s32 2, %v2377_v3  ;;  %v403_v9 = vsub.s32 3, %v2377_v3  ;;  %v376_v10 = vld [vmem:[%s2391_s26] sm:$0xff]  ;;  %1942 = vmatpush3.bf16.msra.mxu1 %v2153_v16  ;;  %v2160_v29 = vld [vmem:[%s2887_s1 + $0xe8] sm:$0xff]   ;;  %s374_s27 = scalar_lea.vmem %s2889_s3, %s1727_s30 }
  0x1a   : > { %v410_v13 = vsub.s32 4, %v2377_v3  ;;  %v417_v15 = vsub.s32 5, %v2377_v3  ;;  %v424_v21 = vsub.s32 6, %v2377_v3  ;;  %v431_v23 = vsub.s32 7, %v2377_v3  ;;  %1943 = vmatprep.subr.bf16.mxu1 %v2156_v22  ;;  %v377_v30 = vld [vmem:[%s2391_s26 + $0x8] sm:$0xff]  ;;  %v2162_v34 = vld [vmem:[%s2887_s1 + $0x58] sm:$0xff]  }
  0x1b   : > { %v390_v11 = vrot.slane %v376_v10, %v389_v5  ;;  %v383_v12 = vrot.slane %v376_v10, %v382_v6  ;;  %1892 = vmatpush3.bf16.msra.mxu0 %v2151_v7  ;;  %v397_v17 = vrot.slane %v376_v10, %v396_v8  ;;  %v404_v18 = vrot.slane %v376_v10, %v403_v9  ;;  %v2161_v31 = vld [vmem:[%s2887_s1 + $0xa8] sm:$0xff]   ;;  %v2163_v35 = vld [vmem:[%s2887_s1 + $0x18] sm:$0xff]   ;;  %v2164_v36 = vld [vmem:[%s2887_s1 + $0xe0] sm:$0xff]   ;;  %s363_s30 = sand.u32 1, %s2248_s14   ;;  %s1810_s12 = sshll.u32 %s2339_s17, 7 }
  0x1c   : > { %1893 = vmatprep.subr.bf16.mxu0 %v2154_v19  ;;  %v411_v25 = vrot.slane %v376_v10, %v410_v13  ;;  %v418_v26 = vrot.slane %v376_v10, %v417_v15  ;;  %v425_v32 = vrot.slane %v376_v10, %v424_v21  ;;  %v432_v33 = vrot.slane %v376_v10, %v431_v23  ;;  %v2165_v37 = vld [vmem:[%s2887_s1 + $0xa0] sm:$0xff]   ;;  %v2166_v40 = vld [vmem:[%s2887_s1 + $0x50] sm:$0xff]   ;;  %v2168_v42 = vld [vmem:[%s2887_s1 + $0xd8] sm:$0xff]   ;;  %s1724_s11 = sshll.u32 %s363_s30, 3  ;;  %s2200_s17 = sshll.u32 %s2262_s28, 4  ;;  %s2201_s17 = int_to_ptr.vmem [resolvable:$false] %s2200_s17 }
  0x1d   : > { %392 = vbcast.lane.b32.xlu0 %v390_v11, 256  ;;  %385 = vbcast.lane.b32.xlu1 %v383_v12, 256  ;;  %v439_v38 = vrot.slane %v377_v30, %v382_v6  ;;  %v446_v39 = vrot.slane %v377_v30, %v389_v5  ;;  %v2167_v41 = vld [vmem:[%s2887_s1 + $0x10] sm:$0xff]   ;;  %v2169_v43 = vld [vmem:[%s2887_s1 + $0x98] sm:$0xff]   ;;  %v453_v44 = vrot.slane %v377_v30, %v396_v8  ;;  %v2170_v46 = vld [vmem:[%s2887_s1 + $0x48] sm:$0xff]   ;;  %s365_s18 = scalar_lea.vmem [#allocation2], %s1724_s11 }
  0x1e   : > { %1944 = vmatpush3.bf16.msra.mxu1 %v2157_v24  ;;  %v460_v45 = vrot.slane %v377_v30, %v403_v9  ;;  %v2171_v47 = vld [vmem:[%s2887_s1 + $0x8] sm:$0xff]   ;;  %v2172_v48 = vld [vmem:[%s2887_s1 + $0xd0] sm:$0xff]   ;;  %v467_v50 = vrot.slane %v377_v30, %v410_v13  ;;  %v474_v51 = vrot.slane %v377_v30, %v417_v15  ;;  %v2174_v52 = vld [vmem:[%s2887_s1 + $0x40] sm:$0xff]   ;;  %v481_v56 = vrot.slane %v377_v30, %v424_v21  ;;  %s1649_s26 = sshll.u32 %s365_s18, 4  ;;  %s2202_s11 = scalar_lea.vmem %s2201_s17, 256  ;;  %s1650_s26 = int_to_ptr.vmem [resolvable:$true] %s1649_s26 }
  0x1f   : > { %1894 = vmatpush3.bf16.msra.mxu0 %v2155_v20  ;;  %1945 = vmatprep.subr.bf16.mxu1 %v2160_v29  ;;  %v2173_v49 = vld [vmem:[%s2887_s1 + $0x90] sm:$0xff]   ;;  %v2175_v53 = vld [vmem:[%s2887_s1] sm:$0xff]   ;;  %v2176_v54 = vld [vmem:[%s2887_s1 + $0xc8] sm:$0xff]   ;;  %v488_v57 = vrot.slane %v377_v30, %v431_v23  ;;  %v2259_v30 = vmov 0.0   ;;  %s2196_s29 = scalar_lea.vmem %s1650_s26, 128  ;;  %p2203_p0 = scmp.lt.s32.totalorder %s1650_s26, %s2201_s17 }
  0x20   : > { %1895 = vmatprep.subr.bf16.mxu0 %v2158_v27  ;;  %v2177_v55 = vld [vmem:[%s2887_s1 + $0x88] sm:$0xff]   ;;  %v2178_v58 = vld [vmem:[%s2887_s1 + $0x138] sm:$0xff]   ;;  %v2179_v59 = vld [vmem:[%s2887_s1 + $0xc0] sm:$0xff]   ;;  %p2197_p11 = scmp.ne.s32.totalorder %s1650_s26, %s2196_s29  ;;  %p2204_p1 = scmp.lt.s32.totalorder %s2202_s11, %s2196_s29 }
  0x21   : > { %399 = vbcast.lane.b32.xlu0 %v397_v17, 256  ;;  %406 = vbcast.lane.b32.xlu1 %v404_v18, 256  ;;  %v2180_v60 = vld [vmem:[%s2887_s1 + $0x80] sm:$0xff]   ;;  %v2181_v3 = vld [vmem:[%s2887_s1 + $0x130] sm:$0xff]   ;;  %v2182_v7 = vld [vmem:[%s2887_s1 + $0x128] sm:$0xff]  }
  0x22   : > { %1946 = vmatpush3.bf16.msra.mxu1 %v2161_v31  ;;  %v2183_v10 = vld [vmem:[%s2887_s1 + $0x120] sm:$0xff]   ;;  %v2184_v15 = vld [vmem:[%s2887_s1 + $0x118] sm:$0xff]   ;;  %v2185_v18 = vld [vmem:[%s2887_s1 + $0x110] sm:$0xff]   ;;  %p2198_p12 = pnand %p2197_p11, %p2356_p5  ;;  %p2205_p2 = por %p2204_p1, %p2203_p0 }
  0x23   : > { %1896 = vmatpush3.bf16.msra.mxu0 %v2159_v28  ;;  %1947 = vmatprep.subr.bf16.mxu1 %v2164_v36  ;;  %v2186_v23 = vld [vmem:[%s2887_s1 + $0x108] sm:$0xff]   ;;  %v1284_v29 = vld [vmem:[%s2891_s5 + $0x18] sm:$0xff] }
  0x24   : > { %1897 = vmatprep.subr.bf16.mxu0 %v2162_v34  ;;  %p2199_p13 = pneg %p2198_p12 }
  0x25   : > { %413 = vbcast.lane.b32.xlu0 %v411_v25, 256  ;;  %420 = vbcast.lane.b32.xlu1 %v418_v26, 256  ;;  %v2187_v26 = vld [vmem:[%s2887_s1 + $0x100] sm:$0xff]  }
  0x26   : > { %1948 = vmatpush3.bf16.msra.mxu1 %v2165_v37  ;;  %p2206_p3 = pnand %p2205_p2, %p2199_p13 }
  0x27   : > { %1898 = vmatpush3.bf16.msra.mxu0 %v2163_v35  ;;  %1949 = vmatprep.subr.bf16.mxu1 %v2168_v42 }
  0x28   : > { %1899 = vmatprep.subr.bf16.mxu0 %v2166_v40 }
  0x29   : > { %427 = vbcast.lane.b32.xlu0 %v425_v32, 256  ;;  %434 = vbcast.lane.b32.xlu1 %v432_v33, 256 }
  0x2a   : > { %1950 = vmatpush3.bf16.msra.mxu1 %v2169_v43 }
  0x2b   : > { %1900 = vmatpush3.bf16.msra.mxu0 %v2167_v41  ;;  %1951 = vmatprep.subr.bf16.mxu1 %v2172_v48 }
  0x2c   : > { %1901 = vmatprep.subr.bf16.mxu0 %v2170_v46 }
  0x2d   : > { %441 = vbcast.lane.b32.xlu0 %v439_v38, 256  ;;  %448 = vbcast.lane.b32.xlu1 %v446_v39, 256 }
  0x2e   : > { %1952 = vmatpush3.bf16.msra.mxu1 %v2173_v49 }
  0x2f   : > { %1902 = vmatpush3.bf16.msra.mxu0 %v2171_v47  ;;  %1953 = vmatprep.subr.bf16.mxu1 %v2176_v54 }
  0x30   : > { %1903 = vmatprep.subr.bf16.mxu0 %v2174_v52 }
  0x31   : > { %455 = vbcast.lane.b32.xlu0 %v453_v44, 256  ;;  %462 = vbcast.lane.b32.xlu1 %v460_v45, 256 }
  0x32   : > { %1954 = vmatpush3.bf16.msra.mxu1 %v2177_v55 }
  0x33   : > { %1904 = vmatpush3.bf16.msra.mxu0 %v2175_v53  ;;  %1955 = vmatprep.subr.bf16.mxu1 %v2179_v59 }
  0x34   : > { %2029 = vmatprep.subr.bf16.mxu0 %v2178_v58 }
  0x35   : > { %469 = vbcast.lane.b32.xlu0 %v467_v50, 256  ;;  %476 = vbcast.lane.b32.xlu1 %v474_v51, 256 }
  0x36   : > { %1956 = vmatpush3.bf16.msra.mxu1 %v2180_v60 }
  0x37   : > { %2057 = vmatprep.subr.mxu1 %v2259_v30 }
  0x39   : > { %483 = vbcast.lane.b32.xlu0 %v481_v56, 256  ;;  %490 = vbcast.lane.b32.xlu1 %v488_v57, 256 }
  0x8f   : > { %v393_v61 = vpop.permute.xlu0 %392  ;;  %v386_v62 = vpop.permute.xlu1 %385 }
  0x90   : > { %vm493_vm0 = vcmp.eq.s32.totalorder %v393_v61, %v2513_v63  ;;  %vm492_vm1 = vcmp.eq.s32.totalorder %v386_v62, %v2513_v63 }
  0x91   : > { %vm1831_vm4 = vmpackc.low %vm493_vm0, %vm492_vm1 }
  0x93   : > { %v400_v1 = vpop.permute.xlu0 %399  ;;  %v407_v2 = vpop.permute.xlu1 %406 }
  0x94   : > { %vm494_vm2 = vcmp.eq.s32.totalorder %v400_v1, %v2513_v63  ;;  %vm495_vm5 = vcmp.eq.s32.totalorder %v407_v2, %v2513_v63 }
  0x95   : > { %vm1829_vm3 = vmpackc.low %vm494_vm2, %vm493_vm0 }
  0x96   : > { %1830 = vmatprep.mubr.msk.bf16.mxu0 %vm1829_vm3, %v2258_v4  ;;  %vm2527_vm8 = vmpackc.low %vm495_vm5, %vm494_vm2 }
  0x97   : > { %v414_v0 = vpop.permute.xlu0 %413  ;;  %v421_v5 = vpop.permute.xlu1 %420  ;;  %1832 = vmatmul.mubr.msk.bf16.vlgmr.msra.gmra.mxu0 %vm1831_vm4, %v2258_v4 }
  0x98   : > { %vm496_vm6 = vcmp.eq.s32.totalorder %v414_v0, %v2513_v63  ;;  %2030 = vmatpush3.bf16.msra.mxu0 %v2178_v58  ;;  %vm497_vm9 = vcmp.eq.s32.totalorder %v421_v5, %v2513_v63  ;;  %v1283_v5 = vld [vmem:[%s2891_s5 + $0x10] sm:$0xff] }
  0x99   : > { %vm1833_vm7 = vmpackc.low %vm496_vm6, %vm495_vm5  ;;  %2031 = vmatprep.subr.bf16.mxu0 %v2181_v3 }
  0x9a   : > { %1854 = vmatprep.mubr.msk.bf16.mxu1 %vm1833_vm7, %v2258_v4  ;;  %1834 = vmatprep.mubr.msk.bf16.mxu0 %vm1833_vm7, %v2258_v4  ;;  %vm2567_vm15 = vmpackc.low %vm497_vm9, %vm496_vm6 }
  0x9b   : > { %1856 = vmatmul.mubr.msk.bf16.vlgmr.msra.gmra.mxu1 %vm2527_vm8, %v2258_v4  ;;  %v428_v8 = vpop.permute.xlu0 %427  ;;  %v435_v9 = vpop.permute.xlu1 %434 }
  0x9c   : > { %vm498_vm10 = vcmp.eq.s32.totalorder %v428_v8, %v2513_v63  ;;  %2032 = vmatpush3.bf16.msra.mxu0 %v2181_v3  ;;  %vm499_vm12 = vcmp.eq.s32.totalorder %v435_v9, %v2513_v63  ;;  %2058 = vmatpush3.msra.mxu1 %v1284_v29 }
  0x9d   : > { %vm1837_vm11 = vmpackc.low %vm498_vm10, %vm497_vm9  ;;  %2033 = vmatprep.subr.bf16.mxu0 %v2182_v7  ;;  %2059 = vmatprep.subr.mxu1 %v2259_v30 }
  0x9e   : > { %1858 = vmatprep.mubr.msk.bf16.mxu1 %vm1837_vm11, %v2258_v4  ;;  %vm2603_vm3 = vmpackc.low %vm499_vm12, %vm498_vm10  ;;  %2060 = vmatpush3.msra.mxu1 %v1283_v5 }
  0x9f   : > { %v442_v11 = vpop.permute.xlu0 %441  ;;  %v449_v12 = vpop.permute.xlu1 %448  ;;  %1836 = vmatmul.mubr.msk.bf16.gmra.mxu0 %vm2527_vm8, %v2258_v4  ;;  %2061 = vmatprep.subr.mxu1 %v2259_v30 }
  0xa0   : > { %vm500_vm13 = vcmp.eq.s32.totalorder %v442_v11, %v2513_v63  ;;  %2034 = vmatpush3.bf16.msra.mxu0 %v2182_v7  ;;  %1838 = vmatprep.mubr.msk.bf16.mxu0 %vm1837_vm11, %v2258_v4  ;;  %vm501_vm1 = vcmp.eq.s32.totalorder %v449_v12, %v2513_v63 }
  0xa1   : > { %vm2559_vm14 = vmpackc.low %vm500_vm13, %vm499_vm12  ;;  %2035 = vmatprep.subr.bf16.mxu0 %v2183_v10 }
  0xa2   : > { %vm2641_vm10 = vmpackc.low %vm501_vm1, %vm500_vm13 }
  0xa3   : > { %1860 = vmatmul.mubr.msk.bf16.gmra.mxu1 %vm2567_vm15, %v2258_v4  ;;  %v456_v16 = vpop.permute.xlu0 %455  ;;  %v463_v17 = vpop.permute.xlu1 %462 }
  0xa4   : > { %1862 = vmatprep.mubr.msk.bf16.mxu1 %vm2559_vm14, %v2258_v4  ;;  %2036 = vmatpush3.bf16.msra.mxu0 %v2183_v10  ;;  %vm502_vm0 = vcmp.eq.s32.totalorder %v456_v16, %v2513_v63  ;;  %vm503_vm8 = vcmp.eq.s32.totalorder %v463_v17, %v2513_v63 }
  0xa5   : > { %2037 = vmatprep.subr.bf16.mxu0 %v2184_v15  ;;  %vm2595_vm2 = vmpackc.low %vm502_vm0, %vm501_vm1  ;;  %vm1362_vm1 = vcmask 1043456  }
  0xa6   : > { %vm1851_vm13 = vmpackc.low %vm503_vm8, %vm502_vm0  ;;  %vm1241_vm0 = vcmask 261120  }
  0xa7   : > { %v470_v19 = vpop.permute.xlu0 %469  ;;  %v477_v20 = vpop.permute.xlu1 %476  ;;  %1840 = vmatmul.mubr.msk.bf16.gmra.mxu0 %vm2567_vm15, %v2258_v4 }
  0xa8   : > { %1842 = vmatprep.mubr.msk.bf16.mxu0 %vm2559_vm14, %v2258_v4  ;;  %2038 = vmatpush3.bf16.msra.mxu0 %v2184_v15  ;;  %vm504_vm6 = vcmp.eq.s32.totalorder %v470_v19, %v2513_v63  ;;  %vm505_vm11 = vcmp.eq.s32.totalorder %v477_v20, %v2513_v63 }
  0xa9   : > { %2039 = vmatprep.subr.bf16.mxu0 %v2185_v18  ;;  %vm1849_vm9 = vmpackc.low %vm504_vm6, %vm503_vm8 }
  0xaa   : > { %vm1875_vm14 = vmpackc.low %vm505_vm11, %vm504_vm6 }
  0xab   : > { %1864 = vmatmul.mubr.msk.bf16.gmra.mxu1 %vm2603_vm3, %v2258_v4  ;;  %v484_v24 = vpop.permute.xlu0 %483  ;;  %v491_v25 = vpop.permute.xlu1 %490 }
  0xac   : > { %1866 = vmatprep.mubr.msk.bf16.mxu1 %vm2595_vm2, %v2258_v4  ;;  %vm507_vm4 = vcmp.eq.s32.totalorder %v491_v25, %v2513_v63  ;;  %2040 = vmatpush3.bf16.msra.mxu0 %v2185_v18  ;;  %vm506_vm5 = vcmp.eq.s32.totalorder %v484_v24, %v2513_v63 }
  0xad   : > { %2041 = vmatprep.subr.bf16.mxu0 %v2186_v23  ;;  %vm2624_vm7 = vmpackc.low %vm507_vm4, %vm506_vm5 }
  0xae   : > { %vm1873_vm12 = vmpackc.low %vm506_vm5, %vm505_vm11 }
  0xaf   : > { %1844 = vmatmul.mubr.msk.bf16.gmra.mxu0 %vm2603_vm3, %v2258_v4 }
  0xb0   : > { %1846 = vmatprep.mubr.msk.bf16.mxu0 %vm2595_vm2, %v2258_v4  ;;  %2042 = vmatpush3.bf16.msra.mxu0 %v2186_v23  ;;  %vm1358_vm2 = vcmask 359424  }
  0xb1   : > { %2043 = vmatprep.subr.bf16.mxu0 %v2187_v26 }
  0xb3   : > { %1868 = vmatmul.mubr.msk.bf16.gmra.mxu1 %vm2641_vm10, %v2258_v4 }
  0xb4   : > { %1870 = vmatprep.mubr.msk.bf16.mxu1 %vm1849_vm9, %v2258_v4  ;;  %2044 = vmatpush3.bf16.msra.mxu0 %v2187_v26 }
  0xb5   : > { %2094 = vmatprep.subr.mxu0 %v2259_v30 }
  0xb7   : > { %1848 = vmatmul.mubr.msk.bf16.gmra.mxu0 %vm2641_vm10, %v2258_v4 }
  0xb8   : > { %1850 = vmatprep.mubr.msk.bf16.mxu0 %vm1849_vm9, %v2258_v4 }
  0xbb   : > { %1872 = vmatmul.mubr.msk.bf16.gmra.mxu1 %vm1851_vm13, %v2258_v4 }
  0xbc   : > { %1874 = vmatprep.mubr.msk.bf16.mxu1 %vm1873_vm12, %v2258_v4 }
  0xbf   : > { %1852 = vmatmul.mubr.msk.bf16.gmra.mxu0 %vm1851_vm13, %v2258_v4 }
  0xc0   : > { %2045 = vmatprep.mubr.msk.bf16.mxu0 %vm2567_vm15, %v2258_v4  ;;  %vm2261_vm15 = vmmov 0  }
  0xc3   : > { %1876 = vmatmul.mubr.msk.bf16.gmra.mxu1 %vm1875_vm14, %v2258_v4 }
  0xc4   : > { %2065 = vmatprep.mubr.msk.f32.mxu1 %vm2261_vm15, %v2259_v30 }
  0xc7   : > { %2046 = vmatmul.mubr.msk.bf16.vlgmr.msra.gmra.mxu0 %vm2603_vm3, %v2258_v4 }
  0xc8   : > { %2049 = vmatprep.mubr.msk.bf16.mxu0 %vm2641_vm10, %v2258_v4 }
  0xcf   : > { %2050 = vmatmul.mubr.msk.bf16.gmra.mxu0 %vm1851_vm13, %v2258_v4 }
  0xd0   : > { %2053 = vmatprep.mubr.msk.bf16.mxu0 %vm1875_vm14, %v2258_v4 }
  0xd7   : > { %2054 = vmatmul.mubr.msk.bf16.gmra.mxu0 %vm2624_vm7, %v2258_v4 }
  0xd8   : > { %2102 = vmatprep.mubr.msk.f32.mxu0 %vm2261_vm15, %v2259_v30 }
 0x157   : > { %v1905_v31 = vpop.f32.mrf.mxu0 }
 0x159   : > { %v1906_v32 = vpop.f32.mrf.mxu0 }
 0x15a   : > { %v1907_v17 = vadd.f32 %v1906_v32, %v1905_v31  ;;  %v1282_v31 = vld [vmem:[%s2891_s5 + $0x8] sm:$0xff] }
 0x15b   : > { %v1957_v33 = vpop.f32.mrf.mxu1  ;;  %v1908_v34 = vpop.f32.mrf.mxu0  ;;  %2062 = vmatpush3.msra.mxu1 %v1282_v31 }
 0x15c   : > { %2063 = vmatprep.subr.mxu1 %v2259_v30 }
 0x15d   : > { %v1958_v35 = vpop.f32.mrf.mxu1  ;;  %v1909_v36 = vpop.f32.mrf.mxu0 }
 0x15e   : > { %v1959_v13 = vadd.f32 %v1958_v35, %v1957_v33  ;;  %v1910_v26 = vadd.f32 %v1909_v36, %v1908_v34 }
 0x15f   : > { %v1960_v37 = vpop.f32.mrf.mxu1  ;;  %v1911_v38 = vpop.f32.mrf.mxu0 }
 0x160   : > { %v1054_v24 = vadd.f32 %v1959_v13, %v1907_v17 }
 0x161   : > { %v1961_v39 = vpop.f32.mrf.mxu1  ;;  %v1912_v40 = vpop.f32.mrf.mxu0 }
 0x162   : > { %v1913_v10 = vadd.f32 %v1912_v40, %v1911_v38  ;;  %v1962_v20 = vadd.f32 %v1961_v39, %v1960_v37 }
 0x163   : > { %v1963_v41 = vpop.f32.mrf.mxu1  ;;  %v1914_v42 = vpop.f32.mrf.mxu0 }
 0x164   : > { %v1057_v35 = vadd.f32 %v1962_v20, %v1910_v26 }
 0x165   : > { %v1964_v43 = vpop.f32.mrf.mxu1  ;;  %v1915_v44 = vpop.f32.mrf.mxu0 }
 0x166   : > { %v1965_v8 = vadd.f32 %v1964_v43, %v1963_v41  ;;  %v1916_v18 = vadd.f32 %v1915_v44, %v1914_v42 }
 0x167   : > { %v1966_v45 = vpop.f32.mrf.mxu1  ;;  %v2684_v46 = vpop.f32.mrf.mxu0 }
 0x168   : > { %v1062_v15 = vadd.f32 %v1965_v8, %v1913_v10 }
 0x169   : > { %v1967_v47 = vpop.f32.mrf.mxu1  ;;  %v2686_v48 = vpop.f32.mrf.mxu0 }
 0x16a   : > { %v1968_v14 = vadd.f32 %v1967_v47, %v1966_v45  ;;  %v1919_v40 = vadd.f32 %v2686_v48, %v2684_v46 }
 0x16b   : > { %v1969_v49 = vpop.f32.mrf.mxu1  ;;  %v2688_v50 = vpop.f32.mrf.mxu0 }
 0x16c   : > { %v1065_v25 = vadd.f32 %v1968_v14, %v1916_v18 }
 0x16d   : > { %v1970_v51 = vpop.f32.mrf.mxu1  ;;  %v2690_v52 = vpop.f32.mrf.mxu0 }
 0x16e   : > { %v1971_v38 = vadd.f32 %v1970_v51, %v1969_v49 }
 0x16f   : > { %v2692_v53 = vpop.f32.mrf.mxu1  ;;  %v1923_v54 = vpop.f32.mrf.mxu0 }
 0x170   : > { %v1070_v49 = vadd.f32 %v1971_v38, %v1919_v40 }
 0x171   : > { %v1973_v55 = vpop.f32.mrf.mxu1  ;;  %v1924_v56 = vpop.f32.mrf.mxu0 }
 0x172   : > { %v1925_v28 = vadd.f32 %v1924_v56, %v1923_v54  ;;  %v1974_v47 = vadd.f32 %v1973_v55, %v2692_v53  ;;  %v1922_v56 = vadd.f32 %v2690_v52, %v2688_v50 }
 0x173   : > { %v1975_v57 = vpop.f32.mrf.mxu1  ;;  %v1926_v58 = vpop.f32.mrf.mxu0 }
 0x175   : > { %v1976_v59 = vpop.f32.mrf.mxu1  ;;  %v1927_v60 = vpop.f32.mrf.mxu0 }
 0x176   : > { %v1977_v23 = vadd.f32 %v1976_v59, %v1975_v57  ;;  %v1928_v41 = vadd.f32 %v1927_v60, %v1926_v58 }
 0x177   : > { %v1978_v61 = vpop.f32.mrf.mxu1  ;;  %v2694_v62 = vpop.f32.mrf.mxu0 }
 0x178   : > { %v1078_v34 = vadd.f32 %v1977_v23, %v1925_v28 }
 0x179   : > { %v2696_v63 = vpop.f32.mrf.mxu0  ;;  %v1979_v1 = vpop.f32.mrf.mxu1 }
 0x17a   : > { %v1980_v39 = vadd.f32 %v1979_v1, %v1978_v61  ;;  %v1931_v60 = vadd.f32 %v2696_v63, %v2694_v62  ;;  %v1073_v61 = vadd.f32 %v1974_v47, %v1922_v56 }
 0x17b   : > { %v2698_v2 = vpop.f32.mrf.mxu0  ;;  %v1981_v3 = vpop.f32.mrf.mxu1 }
 0x17c   : > { %v1081_v51 = vadd.f32 %v1980_v39, %v1928_v41 }
 0x17d   : > { %v2700_v4 = vpop.f32.mrf.mxu0  ;;  %v1982_v6 = vpop.f32.mrf.mxu1 }
 0x17e   : > { %v1983_v57 = vadd.f32 %v1982_v6, %v1981_v3  ;;  %v1934_v52 = vadd.f32 %v2700_v4, %v2698_v2  ;;  %v1281_v2 = vld [vmem:[%s2891_s5] sm:$0xff] }
 0x17f   : > { %v2702_v0 = vpop.f32.mrf.mxu0  ;;  %v1984_v11 = vpop.f32.mrf.mxu1  ;;  %2064 = vmatpush3.msra.mxu1 %v1281_v2 }
 0x180   : > { %v1086_v8 = vadd.f32 %v1983_v57, %v1931_v60  ;;  %2068 = vmatprep.subr.mxu1 %v2259_v30 }
 0x181   : > { %v2707_v7 = vpop.f32.mrf.mxu0  ;;  %v1985_v21 = vpop.f32.mrf.mxu1 }
 0x182   : > { %v1986_v55 = vadd.f32 %v1985_v21, %v1984_v11  ;;  %v1937_v3 = vadd.f32 %v2707_v7, %v2702_v0 }
 0x183   : > { %v2710_v9 = vpop.f32.mrf.mxu0  ;;  %v1987_v32 = vpop.f32.mrf.mxu1 }
 0x184   : > { %v1089_v11 = vadd.f32 %v1986_v55, %v1934_v52 }
 0x185   : > { %v2712_v12 = vpop.f32.mrf.mxu0  ;;  %v1988_v44 = vpop.f32.mrf.mxu1 }
 0x186   : > { %v1989_v1 = vadd.f32 %v1988_v44, %v1987_v32 }
 0x187   : > { %v2047_v16 = vpop.f32.mrf.mxu0  ;;  %v1990_v48 = vpop.f32.mrf.mxu1 }
 0x188   : > { %v2714_v19 = vadd.f32 %v2047_v16, %v1062_v15  ;;  %v1094_v13 = vadd.f32 %v1989_v1, %v1937_v3  ;;  %v1940_v15 = vadd.f32 %v2712_v12, %v2710_v9  ;;  %v1280_v3 = vld [vmem:[%s2890_s4 + $0x28] sm:$0xf] }
 0x189   : > { %v1134_v22 = vpop.f32.mrf.mxu0  ;;  %v1991_v10 = vpop.f32.mrf.mxu1 }
 0x18a   : > { %1197 = vrot.lane.b32.xlu0 %v2714_v19, %s2260_s21  ;;  %v2718_v29 = vadd.f32 %v1134_v22, %v1054_v24  ;;  %v1992_v63 = vadd.f32 %v1991_v10, %v1990_v48 }
 0x18b   : > { %v2048_v27 = vpop.f32.mrf.mxu0 }
 0x18c   : > { %v2720_v33 = vadd.f32 %v2048_v27, %v1065_v25  ;;  %v1097_v18 = vadd.f32 %v1992_v63, %v1940_v15  ;;  %v1277_v63 = vld [vmem:[%s2890_s4 + $0x10] sm:$0xff]  ;;  %v1439_v15 = vld [vmem:[%s2892_s6 + $0x18] sm:$0xff] }
 0x18d   : > { %v1137_v37 = vpop.f32.mrf.mxu0 }
 0x18e   : > { %1199 = vrot.lane.b32.xlu1 %v2720_v33, %s2260_s21  ;;  %1193 = vrot.lane.b32.xlu0 %v2718_v29, %s2260_s21  ;;  %v1138_v42 = vadd.f32 %v1137_v37, %v1057_v35 }
 0x18f   : > { %v2051_v36 = vpop.f32.mrf.mxu0 }
 0x190   : > { %v1159_v43 = vadd.f32 %v2051_v36, %v1078_v34 }
 0x191   : > { %v1150_v45 = vpop.f32.mrf.mxu0 }
 0x192   : > { %1195 = vrot.lane.b32.xlu1 %v1138_v42, %s2260_s21  ;;  %1205 = vrot.lane.b32.xlu0 %v1159_v43, %s2260_s21  ;;  %v1151_v59 = vadd.f32 %v1150_v45, %v1070_v49 }
 0x193   : > { %v2052_v54 = vpop.f32.mrf.mxu0 }
 0x194   : > { %v1162_v46 = vadd.f32 %v2052_v54, %v1081_v51 }
 0x195   : > { %v1153_v58 = vpop.f32.mrf.mxu0 }
 0x196   : > { %1207 = vrot.lane.b32.xlu1 %v1162_v46, %s2260_s21  ;;  %1201 = vrot.lane.b32.xlu0 %v1151_v59, %s2260_s21  ;;  %v1154_v5 = vadd.f32 %v1153_v58, %v1073_v61 }
 0x197   : > { %v2055_v53 = vpop.f32.mrf.mxu0 }
 0x198   : > { %v1175_v16 = vadd.f32 %v2055_v53, %v1094_v13  ;;  %v1276_v13 = vld [vmem:[%s2890_s4 + $0x8] sm:$0xff] }
 0x199   : > { %v1166_v50 = vpop.f32.mrf.mxu0 }
 0x19a   : > { %v1167_v6 = vadd.f32 %v1166_v50, %v1086_v8  ;;  %1203 = vrot.lane.b32.xlu1 %v1154_v5, %s2260_s21  ;;  %v1799_v8 = vld [vmem:[%s2888_s2] ss:$0 sm:$0xff] }
 0x19b   : > { %v2056_v62 = vpop.f32.mrf.mxu0 }
 0x19c   : > { %1209 = vrot.lane.b32.xlu0 %v1167_v6, %s2260_s21  ;;  %v1178_v4 = vadd.f32 %v2056_v62, %v1097_v18  ;;  %v1278_v62 = vld [vmem:[%s2890_s4 + $0x18] sm:$0xff]  ;;  %v1436_v18 = vld [vmem:[%s2892_s6] sm:$0xff] }
 0x19d   : > { %v1169_v14 = vpop.f32.mrf.mxu0 }
 0x19e   : > { %v1170_v17 = vadd.f32 %v1169_v14, %v1089_v11  ;;  %v1275_v11 = vld [vmem:[%s2890_s4] sm:$0xff] }
 0x19f   : > { %v1274_v14 = vld [vmem:[%s374_s27] sm:$0xff]  ;;  %s1636_s27 = scalar_lea.sflag [#allocation3], %s363_s30 }
 0x1a0   : > { %1211 = vrot.lane.b32.xlu1 %v1170_v17, %s2260_s21  ;;  %1213 = vrot.lane.b32.xlu0 %v1175_v16, %s2260_s21 }
 0x1a4   : > { %1215 = vrot.lane.b32.xlu1 %v1178_v4, %s2260_s21 }
 0x1fc   : > { %v1198_v0 = vpop.permute.xlu0 %1197 }
 0x1fd   : > { %v1231_v32 = vadd.f32 %v1198_v0, %v2714_v19 }
 0x200   : > { %v1194_v7 = vpop.permute.xlu0 %1193  ;;  %v1200_v9 = vpop.permute.xlu1 %1199 }
 0x201   : > { %v1229_v35 = vadd.f32 %v1194_v7, %v2718_v29  ;;  %v1232_v37 = vadd.f32 %v1200_v9, %v2720_v33  ;;  %v1244_v29 = vsel %vm1241_vm0, %v1231_v32, -inf }
 0x203   : > { %v1242_v33 = vsel %vm1241_vm0, %v1229_v35, -inf  ;;  %v1245_v51 = vsel %vm1241_vm0, %v1232_v37, -inf }
 0x204   : > { %v1206_v12 = vpop.permute.xlu0 %1205  ;;  %v1196_v20 = vpop.permute.xlu1 %1195 }
 0x205   : > { %v1235_v26 = vadd.f32 %v1206_v12, %v1159_v43  ;;  %v1230_v27 = vadd.f32 %v1196_v20, %v1138_v42  ;;  %v1538_v12 = vld [vmem:[%s2894_s8 + $0x18] sm:$0xff]  ;;  %v1537_v20 = vld [vmem:[%s2894_s8 + $0x10] sm:$0xff] }
 0x206   : > { %2095 = vmatpush3.msra.mxu0 %v1538_v12 }
 0x207   : > { %v1250_v44 = vsel %vm1241_vm0, %v1235_v26, -inf  ;;  %v1243_v42 = vsel %vm1241_vm0, %v1230_v27, -inf  ;;  %2096 = vmatprep.subr.mxu0 %v2259_v30 }
 0x208   : > { %v1208_v21 = vpop.permute.xlu1 %1207  ;;  %v1202_v22 = vpop.permute.xlu0 %1201  ;;  %2097 = vmatpush3.msra.mxu0 %v1537_v20 }
 0x209   : > { %v1233_v28 = vadd.f32 %v1202_v22, %v1151_v59  ;;  %v1236_v31 = vadd.f32 %v1208_v21, %v1162_v46  ;;  %v1251_v59 = vmax.f32 %v1244_v29, %v1250_v44  ;;  %v1536_v21 = vld [vmem:[%s2894_s8 + $0x8] sm:$0xff]  ;;  %2098 = vmatprep.subr.mxu0 %v2259_v30  ;;  %v1535_v22 = vld [vmem:[%s2894_s8] sm:$0xff] }
 0x20a   : > { %2099 = vmatpush3.msra.mxu0 %v1536_v21 }
 0x20b   : > { %v1246_v43 = vsel %vm1241_vm0, %v1233_v28, -inf  ;;  %v1252_v45 = vsel %vm1241_vm0, %v1236_v31, -inf  ;;  %2100 = vmatprep.subr.mxu0 %v2259_v30 }
 0x20c   : > { %v1204_v23 = vpop.permute.xlu1 %1203  ;;  %v1247_v46 = vmax.f32 %v1242_v33, %v1246_v43  ;;  %v1253_v48 = vmax.f32 %v1245_v51, %v1252_v45  ;;  %2101 = vmatpush3.msra.mxu0 %v1535_v22 }
 0x20d   : > { %v1234_v25 = vadd.f32 %v1204_v23, %v1154_v5  ;;  %v1803_v23 = vld [vmem:[%s2893_s7] ss:$0 sm:$0xff] }
 0x20e   : > { %v1210_v24 = vpop.permute.xlu0 %1209 }
 0x20f   : > { %v1248_v34 = vsel %vm1241_vm0, %v1234_v25, -inf  ;;  %v1237_v36 = vadd.f32 %v1210_v24, %v1167_v6  ;;  %v1279_v6 = vld [vmem:[%s2890_s4 + $0x20] sm:$0xff] }
 0x210   : > { %v1249_v47 = vmax.f32 %v1243_v42, %v1248_v34 }
 0x211   : > { %v1254_v54 = vsel %vm1241_vm0, %v1237_v36, -inf  ;;  %v1806_v36 = vld [vmem:[%s2895_s9] ss:$0 sm:$0xff] }
 0x212   : > { %v1214_v38 = vpop.permute.xlu0 %1213  ;;  %v1212_v39 = vpop.permute.xlu1 %1211  ;;  %v1255_v61 = vmax.f32 %v1247_v46, %v1254_v54 }
 0x213   : > { %v1239_v40 = vadd.f32 %v1214_v38, %v1175_v16  ;;  %v1238_v41 = vadd.f32 %v1212_v39, %v1170_v17  ;;  %v1438_v16 = vld [vmem:[%s2892_s6 + $0x10] sm:$0xff]  ;;  %v1437_v17 = vld [vmem:[%s2892_s6 + $0x8] sm:$0xff] }
 0x215   : > { %v1256_v19 = vsel %vm1241_vm0, %v1238_v41, -inf  ;;  %v1258_v56 = vsel %vm1241_vm0, %v1239_v40, -inf }
 0x216   : > { %v1216_v49 = vpop.permute.xlu1 %1215  ;;  %v1257_v58 = vmax.f32 %v1249_v47, %v1256_v19  ;;  %v1259_v53 = vmax.f32 %v1251_v59, %v1258_v56 }
 0x217   : > { %v1240_v57 = vadd.f32 %v1216_v49, %v1178_v4 }
 0x218   : > { %v1262_v1 = vmax.f32 %v1255_v61, %v1257_v58 }
 0x219   : > { %v1260_v60 = vsel %vm1241_vm0, %v1240_v57, -inf }
 0x21a   : > { %v1261_v55 = vmax.f32 %v1253_v48, %v1260_v60 }
 0x21c   : > { %v1263_v5 = vmax.f32 %v1259_v53, %v1261_v55 }
 0x21e   : > { %v1264_v10 = vmax.f32 %v1262_v1, %v1263_v5 }
 0x220   : > { %v1272_v50 = vadd.f32 %v1799_v8, %v1264_v10 }
 0x222   : > { %v1273_v52 = vmax.f32 %v1272_v50, 0.0 }
 0x224   : > { %2066 = vmatmul.mubr.msk.f32.vlgmr.msra.gmra.mxu1 %vm1241_vm0, %v1273_v52 }
 0x225   : > { %2069 = vmatpush3.msk.msra.mxu1 %vm1362_vm1, %v1280_v3  ;;  %2080 = vmatprep.mubr.msk.f32.mxu1 %vm2261_vm15, %v2259_v30 }
 0x226   : > { %2070 = vmatprep.subr.mxu1 %v2259_v30 }
 0x227   : > { %2071 = vmatpush3.msra.mxu1 %v1279_v6 }
 0x228   : > { %2072 = vmatprep.subr.mxu1 %v2259_v30 }
 0x229   : > { %2073 = vmatpush3.msra.mxu1 %v1278_v62 }
 0x22a   : > { %2074 = vmatprep.subr.mxu1 %v2259_v30 }
 0x22b   : > { %2075 = vmatpush3.msra.mxu1 %v1277_v63 }
 0x22c   : > { %2076 = vmatprep.subr.mxu1 %v2259_v30 }
 0x22d   : > { %2077 = vmatpush3.msra.mxu1 %v1276_v13 }
 0x22e   : > { %2078 = vmatprep.subr.mxu1 %v2259_v30 }
 0x22f   : > { %2079 = vmatpush3.msra.mxu1 %v1275_v11 }
 0x230   : > { %2081 = vmatmul.mubr.msk.f32.vlgmr.msra.gmra.mxu1 %vm1358_vm2, %v1274_v14  ;;  %2083 = vmatprep.subr.mxu1 %v2259_v30 }
 0x231   : > { %2091 = vmatprep.mubr.msk.f32.mxu1 %vm2261_vm15, %v2259_v30  ;;  %2084 = vmatpush3.msra.mxu1 %v1439_v15 }
 0x232   : > { %2085 = vmatprep.subr.mxu1 %v2259_v30 }
 0x233   : > { %2086 = vmatpush3.msra.mxu1 %v1438_v16 }
 0x234   : > { %2087 = vmatprep.subr.mxu1 %v2259_v30 }
 0x235   : > { %2088 = vmatpush3.msra.mxu1 %v1437_v17 }
 0x236   : > { %2089 = vmatprep.subr.mxu1 %v2259_v30 }
 0x237   : > { %2090 = vmatpush3.msra.mxu1 %v1436_v18 }
 0x2e4   : > { %v1354_v2 = vpop.f32.mrf.mxu1 }
 0x2e6   : > { %v2067_v4 = vpop.f32.mrf.mxu1 }
 0x2f0   : > { %v1432_v0 = vpop.f32.mrf.mxu1 }
 0x2f1   : > { %v1433_v7 = vadd.f32 %v1432_v0, %v1354_v2 }
 0x2f2   : > { %v2082_v9 = vpop.f32.mrf.mxu1 }
 0x2f3   : > { %2092 = vmatmul.mubr.msk.f32.vlgmr.msra.gmra.mxu1 %vm1241_vm0, %v1433_v7 }
 0x3b3   : > { %v1516_v24 = vpop.f32.mrf.mxu1 }
 0x3b4   : > { %v1517_v25 = vadd.f32 %v1803_v23, %v1516_v24 }
 0x3b5   : > { %v2093_v26 = vpop.f32.mrf.mxu1 }
 0x3b6   : > { %v1526_v27 = vmax.f32 %v1517_v25, 0.0  ;;  %v1805_v28 = vmul.f32 -1.442695, %v1517_v25 }
 0x3b8   : > { %1528 = vrot.lane.b32.xlu0 %v1526_v27, %s2260_s21  ;;  %2188 = vpow2.f32 %v1805_v28 }
 0x3c5   : > { %v2189_v31 = vpop.eup %2188 }
 0x3c6   : > { %v1523_v32 = vadd.f32 1.0, %v2189_v31 }
 0x3c8   : > { %2190 = vrcp.f32 %v1523_v32 }
 0x3d5   : > { %v2191_v35 = vpop.eup %2190 }
 0x3d6   : > { %v1532_v37 = vsub.f32 1.0, %v2191_v35 }
 0x3d8   : > { %v1533_v39 = vmul.f32 %v1532_v37, %v1433_v7 }
 0x42a   : > { %v1529_v38 = vpop.permute.xlu0 %1528 }
 0x42b   : > { %v1531_v30 = vmul.f32 %v2191_v35, %v1529_v38 }
 0x42d   : > { %v1534_v34 = vadd.f32 %v1533_v39, %v1531_v30 }
 0x42f   : > { %2103 = vmatmul.mubr.msk.f32.vlgmr.msra.gmra.mxu0 %vm1241_vm0, %v1534_v34 }
 0x4ef   : > { %v1615_v40 = vpop.f32.mrf.mxu0 }
 0x4f0   : > { %v1616_v41 = vadd.f32 %v1806_v36, %v1615_v40 }
 0x4f1   : > { %v2104_v44 = vpop.f32.mrf.mxu0 }
 0x4f2   : > { %v1625_v42 = vmax.f32 %v1616_v41, 0.0  ;;  %v1808_v43 = vmul.f32 -1.442695, %v1616_v41 }
 0x4f4   : > { %1627 = vrot.lane.b32.xlu1 %v1625_v42, %s2260_s21  ;;  %2192 = vpow2.f32 %v1808_v43  ;;  %s1647_s21 = scalar_lea.hbm %s2896_s10, %s1810_s12 }
 0x501   : > { %v2193_v45 = vpop.eup %2192 }
 0x502   : > { %v1622_v19 = vadd.f32 1.0, %v2193_v45 }
 0x504   : > { %2194 = vrcp.f32 %v1622_v19 }
 0x511   : > { %v2195_v29 = vpop.eup %2194 }
 0x512   : > { %v1631_v33 = vsub.f32 1.0, %v2195_v29 }
 0x514   : > { %v1632_v51 = vmul.f32 %v1631_v33, %v1534_v34 }
 0x566   : > { %v1628_v47 = vpop.permute.xlu1 %1627 }
 0x567   : > { %v1630_v49 = vmul.f32 %v2195_v29, %v1628_v47 }
 0x569   : > { %v1633_v54 = vadd.f32 %v1632_v51, %v1630_v49 }
 0x56b   : > { %1634 = vst.msk [vmem:[%s365_s18] sm:$0xff] %vm1241_vm0, %v1633_v54 }
 0x56c   : > { %2209 = shalt.err (!%p2206_p3)
}
 0x56d   : > { %s2210_s20 = scalar_lea.hbm %s1647_s21, 128  ;;  %s2214_s18 = scalar_lea.hbm %s2896_s10, 256 }
 0x56e   : > { %p2211_p4 = scmp.ne.s32.totalorder %s1647_s21, %s2210_s20  ;;  %p2215_p9 = scmp.lt.s32.totalorder %s1647_s21, %s2896_s10 }
 0x56f   : > { %p2216_p10 = scmp.lt.s32.totalorder %s2214_s18, %s2210_s20 }
 0x570   : > { %p2212_p7 = pnand %p2211_p4, %p2356_p5 }
 0x571   : > { %p2217_p11 = por %p2216_p10, %p2215_p9 }
 0x572   : > { %p2213_p8 = pneg %p2212_p7 }
 0x574   : > { %p2218_p12 = pnand %p2217_p11, %p2213_p8 }
 0x576   : > { %2221 = shalt.err (!%p2218_p12)
}
 0x577   : > { %2105 = dma.vmem_to_hbm [thread:$0]  (%p2356_p5), %s1650_s26, 128, %s1647_s21, %s1636_s27  }
 0x578 PF: > { %p2111_p13 = scmp.ge.s32.totalorder %s2256_s16, 2  ;;  %s1661_s29 = sand.u32 1, %s2244_s13  }
 0x579   : > { %s1662_s28 = scalar_lea.sflag [#allocation3], %s1661_s29 }
 0x57a   : > { %p2108_p0 = pnand %p2111_p13, %p2360_p6 }
 0x57c   : > { %p2109_p1 = pneg %p2108_p0 }
 0x57e   : > { %2239 = dma.done.wait (%p2109_p1), %s1662_s28, 128  }
 0x57f   : > { %2241 = vsyncadd (%p2109_p1), %s1662_s28, 4294967168  ;;  %p20_p2 = scmp.ge.s32.totalorder %s2343_s19, 4   ;;  %s2915_s13 = smov %s2248_s14 }
 0x580   : > { %s2916_s14 = smov %s2252_s15  ;;  %s2917_s15 = smov %s2354_s22 }
 0x581   : > { %s2918_s16 = smov %s2343_s19  ;;  %22 = sbr.rel (!%p20_p2) target bundleno = 5 (0x5), region = 98 }
 0x586   :  { %1667 = vsyncpa [#allocation3], 1 }
 0x587   :  { %1669 = vsyncpa [#allocation3 + $0x1], 1 }

</bundles_post_ra>
